<compile_context>
chip_gen: v7x
topology: tpu7x:2x2x1
jax: 0.10.0
libtpu: 0.0.40
codegen_flags: <defaults>
</compile_context>

<pallas_src>
import jax
import jax.numpy as jnp
from jax.experimental import pallas as pl
from jax.experimental.pallas import tpu as pltpu

_MB = 1024 * 1024


# ----------------------------- hardware budgets ----------------------------- #

def _sublane_pack(itemsize):
    """Sublane packing for the dtype: 8 rows (f32), 16 (bf16), 32 (int8/fp8)."""
    return max(8, 32 // max(1, int(itemsize)))


def _vmem_budgets():
    """(double-buffered working-set budget, scoped-VMEM request cap) in bytes."""
    phys = 64 * _MB                      # assume v7x-like (safest) if unknown
    try:
        info = pltpu.get_tpu_info()
        phys = int(getattr(info, "vmem_capacity_bytes", phys) or phys)
    except Exception:
        pass
    if phys >= 96 * _MB:                 # v5e / v6e: 128 MiB physical VMEM
        return 40 * _MB, 64 * _MB
    return 24 * _MB, 36 * _MB            # v7x: 64 MiB per TensorCore


def _maybe_vmem_limit(cp_kwargs, need_bytes, scoped_cap):
    if need_bytes > 12 * _MB:
        cp_kwargs["vmem_limit_bytes"] = int(
            min(scoped_cap, need_bytes * 3 // 2 + 4 * _MB))


# ------------------------------ kernel bodies ------------------------------- #

def _make_sum_kernel(n_in, use_weight):
    """Sum n_in equal-shape 2-D slabs (optionally weighted); f32 accumulation."""

    def compute(w, refs):
        out_ref = refs[n_in]
        acc = refs[0][...].astype(jnp.float32)
        if use_weight:
            acc = acc * w[0]
        for i in range(1, n_in):
            a = refs[i][...].astype(jnp.float32)
            if use_weight:
                a = a * w[i]
            acc = acc + a
        out_ref[...] = acc.astype(out_ref.dtype)

    if use_weight:
        def kernel(w_ref, *refs):
            compute([w_ref[i] for i in range(n_in)], refs)
    else:
        def kernel(*refs):
            compute(None, refs)
    return kernel


def _make_fused3d_kernel(nx, feat_info, use_weight):
    """Fused sum over (channels, hw) blocks with per-feature channel handling.

    feat_info: list of (c_block, kind):
      'full'    -> block has nx channels, plain add
      'slice'   -> block has na > nx channels, add a[:nx]   (torch: x + a[:, :nx])
      'partial' -> block has na < nx channels, add to rows [0, na)
                   (torch: x[:, :na] += a), via masked partial stores.
    """
    n_in = 1 + len(feat_info)

    def compute(w, refs):
        out_ref = refs[n_in]
        acc = refs[0][...].astype(jnp.float32)
        if use_weight:
            acc = acc * w[0]
        partials = []
        for i, (cb, kind) in enumerate(feat_info):
            a = refs[1 + i][...].astype(jnp.float32)
            if use_weight:
                a = a * w[1 + i]
            if kind == "full":
                acc = acc + a
            elif kind == "slice":
                acc = acc + a[:nx, :]
            else:  # 'partial'
                partials.append((cb, a))
        out_ref[...] = acc.astype(out_ref.dtype)
        # Progressive prefix adds for na < nx features (descending na): only
        # start-0 value slices and masked sublane stores are needed (no
        # scatter / concat), which keeps Mosaic lowering simple and robust.
        partials.sort(key=lambda t: -t[0])
        run = acc
        for na, a in partials:
            run = run[:na, :] + a
            out_ref[:na, :] = run.astype(out_ref.dtype)

    if use_weight:
        def kernel(w_ref, *refs):
            compute([w_ref[i] for i in range(n_in)], refs)
    else:
        def kernel(*refs):
            compute(None, refs)
    return kernel


# ------------------------------ layout helpers ------------------------------ #

def _lane_dense_shape(total, pack):
    """(rows, lanes, padded_total_or_None) with lanes a multiple of 128."""
    best = None
    for lanes in (4096, 2048, 1024, 512, 256, 128):
        if total % lanes == 0:
            rows = total // lanes
            if rows >= pack:
                return rows, lanes, None
            if best is None:
                best = (rows, lanes, None)
    if best is not None:
        return best
    # No multiple-of-128 factorization: pad the flat slab so stores stay
    # lane-dense (unmasked vst), slice the result back afterwards.
    unit = pack * 128
    padded = ((total + unit - 1) // unit) * unit
    for lanes in (1024, 512, 256, 128):
        if padded % lanes == 0 and padded // lanes >= pack:
            return padded // lanes, lanes, padded
    return padded // 128, 128, padded


def _pick_rows_2d(m, n_streams, lanes, itemsize, work_budget):
    """Row tile: ~2-4 MiB per-stream blocks, double-buffered set under budget,
    >= 2 grid steps when possible (v7x megacore), prefer a divisor of m."""
    pack = _sublane_pack(itemsize)
    if m <= pack:
        return m
    per_row = 2 * n_streams * lanes * itemsize
    target_rows = max(pack, (4 * _MB) // max(1, lanes * itemsize))
    cap = min(m, target_rows, max(pack, work_budget // per_row))
    cap = max(pack, cap - cap % pack)
    if cap >= m and m >= 2 * pack:            # guarantee >= 2 grid steps
        half = m // 2
        cap = max(pack, half - half % pack)
    t = cap
    while t >= max(pack, cap // 2):
        if m % t == 0:
            return t
        t -= pack
    return cap


def _pick_hw_tile(hw, nx, blocks_c, itemsize, work_budget, batch):
    """Lane (H*W) tile for the fused 3-D path."""
    if hw % 128 != 0:
        # TODO(synk): pad H*W to a multiple of 128 instead of taking the full
        # (masked-store) extent when the spatial size is not lane-aligned.
        return hw
    ch_total = 2 * nx + sum(blocks_c)          # x + out + every feature block
    per_col = 2 * ch_total * itemsize          # double-buffered bytes / column
    max_c = max([nx] + list(blocks_c))
    t_stream = max(128, (4 * _MB) // max(1, max_c * itemsize))
    cap = min(hw, t_stream, max(128, work_budget // per_col))
    cap = max(128, cap - cap % 128)
    if batch * ((hw + cap - 1) // cap) < 2 and hw >= 256:   # >= 2 grid steps
        half = hw // 2
        cap = max(128, half - half % 128)
    t = cap
    while t >= max(128, cap // 2):
        if hw % t == 0:
            return t
        t -= 128
    return cap


# ------------------------------ pallas callers ------------------------------ #

def _fuse_matched_2d(x, feats, w_vals, work_budget, scoped_cap, donate_x):
    """x (+ optional weights) plus equal-channel features on a lane-dense slab."""
    shape, dtype = x.shape, x.dtype
    itemsize = int(dtype.itemsize)
    pack = _sublane_pack(itemsize)
    total = int(x.size)
    rows, lanes, padded = _lane_dense_shape(total, pack)

    def to_slab(a):
        flat = a.reshape(-1)
        if padded is not None:
            flat = jnp.pad(flat, (0, padded - total))
        return flat.reshape(rows, lanes)

    slabs = [to_slab(x)] + [to_slab(a) for a in feats]
    n_in = len(slabs)
    use_weight = w_vals is not None

    tm = _pick_rows_2d(rows, n_in + 1, lanes, itemsize, work_budget)
    grid = ((rows + tm - 1) // tm,)
    spec = pl.BlockSpec((tm, lanes), lambda i: (i, 0))

    in_specs, args = [], []
    if use_weight:
        in_specs.append(pl.BlockSpec(memory_space=pltpu.MemorySpace.SMEM))
        args.append(w_vals)
    in_specs += [spec] * n_in
    args += slabs

    cp_kwargs = dict(dimension_semantics=("parallel",))
    _maybe_vmem_limit(cp_kwargs, 2 * (n_in + 1) * tm * lanes * itemsize, scoped_cap)

    call_kwargs = {}
    if donate_x:
        call_kwargs["input_output_aliases"] = {(1 if use_weight else 0): 0}

    y = pl.pallas_call(
        _make_sum_kernel(n_in, use_weight),
        out_shape=jax.ShapeDtypeStruct((rows, lanes), dtype),
        grid=grid,
        in_specs=in_specs,
        out_specs=spec,
        compiler_params=pltpu.CompilerParams(**cp_kwargs),
        **call_kwargs,
    )(*args)

    y = y.reshape(-1)
    if padded is not None:
        y = y[:total]
    return y.reshape(shape)


def _fuse_all_3d(x, feats, w_vals, work_budget, scoped_cap, donate_x):
    """One fused kernel over (batch, channels, H*W) handling mismatched channels."""
    N, nx, H, W = x.shape
    hw = H * W
    dtype = x.dtype
    itemsize = int(dtype.itemsize)
    pack = _sublane_pack(itemsize)
    use_weight = w_vals is not None

    blocks_c, feat_info = [], []
    for a in feats:
        na = int(a.shape[1])
        if na == nx:
            blocks_c.append(nx); feat_info.append((nx, "full"))
        elif na < nx:
            blocks_c.append(na); feat_info.append((na, "partial"))
        elif nx % pack == 0:
            # Sublane-aligned nx: slice the oversized feature at the BlockSpec
            # level -> only its first nx channels are ever DMA'd.
            blocks_c.append(nx); feat_info.append((nx, "full"))
        else:
            blocks_c.append(na); feat_info.append((na, "slice"))

    hw_t = _pick_hw_tile(hw, nx, blocks_c, itemsize, work_budget, N)
    grid = (N, (hw + hw_t - 1) // hw_t)

    x3 = x.reshape(N, nx, hw)
    f3 = [a.reshape(a.shape[0], a.shape[1], hw) for a in feats]

    def ch_spec(c):
        return pl.BlockSpec((None, c, hw_t), lambda b, h: (b, 0, h))

    in_specs, args = [], []
    if use_weight:
        in_specs.append(pl.BlockSpec(memory_space=pltpu.MemorySpace.SMEM))
        args.append(w_vals)
    in_specs.append(ch_spec(nx)); args.append(x3)
    for a, c in zip(f3, blocks_c):
        in_specs.append(ch_spec(c)); args.append(a)

    cp_kwargs = dict(dimension_semantics=("parallel", "parallel"))
    _maybe_vmem_limit(cp_kwargs,
                      2 * (2 * nx + sum(blocks_c)) * hw_t * itemsize, scoped_cap)

    call_kwargs = {}
    if donate_x:
        call_kwargs["input_output_aliases"] = {(1 if use_weight else 0): 0}

    y = pl.pallas_call(
        _make_fused3d_kernel(nx, feat_info, use_weight),
        out_shape=jax.ShapeDtypeStruct((N, nx, hw), dtype),
        grid=grid,
        in_specs=in_specs,
        out_specs=ch_spec(nx),
        compiler_params=pltpu.CompilerParams(**cp_kwargs),
        **call_kwargs,
    )(*args)
    return y.reshape(N, nx, H, W)


# ------------------------------ public wrapper ------------------------------ #

def weighted_feature_fusion(x, outputs, layers, w_param=None, donate_x=False):
    """Pallas TPU implementation of WeightedFeatureFusion.forward.

    x:        (N, C, H, W)
    outputs:  list of prior-layer features (N, Ci, H, W)
    layers:   (possibly negative) indices into `outputs`
    w_param:  optional raw weight parameter of shape (len(layers) + 1,)
    donate_x: alias x's HBM buffer to the output (only safe if the caller does
              not reuse x afterwards, mirroring the in-place PyTorch update).
    """
    use_weight = w_param is not None
    n = len(layers) + 1
    N, nx, H, W = x.shape
    itemsize = int(x.dtype.itemsize)

    feats = [outputs[l] for l in layers]
    any_mismatch = any(int(a.shape[1]) != nx for a in feats)

    w_eff = None
    if use_weight:
        w_eff = jax.nn.sigmoid(w_param.astype(jnp.float32)) * (2.0 / n)

    work_budget, scoped_cap = _vmem_budgets()

    if not feats:
        if not use_weight:
            return x
        return _fuse_matched_2d(x, [], w_eff, work_budget, scoped_cap, donate_x)

    if not any_mismatch:
        return _fuse_matched_2d(x, feats, w_eff, work_budget, scoped_cap, donate_x)

    # Fused 3-D path: make sure a minimal lane tile still fits the VMEM cap.
    min_hw_t = (H * W) if (H * W) % 128 else 128
    ch_upper = 2 * nx + sum(int(a.shape[1]) for a in feats)
    if 2 * ch_upper * min_hw_t * itemsize <= scoped_cap:
        return _fuse_all_3d(x, feats, w_eff, work_budget, scoped_cap, donate_x)

    # TODO(synk): extreme channel counts that overflow even a 128-lane tile —
    # keep matched features fused in the kernel, do mismatched adds in XLA.
    matched = [(a, i + 1) for i, a in enumerate(feats) if int(a.shape[1]) == nx]
    mismatched = [(a, i + 1) for i, a in enumerate(feats) if int(a.shape[1]) != nx]
    w_m = None
    if use_weight:
        w_m = w_eff[jnp.asarray([0] + [wi for _, wi in matched], dtype=jnp.int32)]
    y = _fuse_matched_2d(x, [a for a, _ in matched], w_m,
                         work_budget, scoped_cap, donate_x)
    for a, wi in mismatched:
        na = int(a.shape[1])
        if nx > na:
            a_w = a * w_eff[wi] if use_weight else a
            y = y.at[:, :na].add(a_w.astype(y.dtype))
        else:
            a_w = a[:, :nx] * w_eff[wi] if use_weight else a[:, :nx]
            y = y + a_w.astype(y.dtype)
    return y


# ----------------------------- pure-JAX reference --------------------------- #

def _reference(x, outputs, layers, w_param=None):
    use_weight = w_param is not None
    n = len(layers) + 1
    if use_weight:
        w = jax.nn.sigmoid(w_param.astype(jnp.float32)) * (2.0 / n)
        x = x * w[0]
    nx = x.shape[1]
    for i in range(n - 1):
        a = outputs[layers[i]]
        if use_weight:
            a = a * w[i + 1]
        na = a.shape[1]
        if nx == na:
            x = x + a
        elif nx > na:
            x = x.at[:, :na].add(a)
        else:
            x = x + a[:, :nx]
    return x


if __name__ == "__main__":
    key = jax.random.PRNGKey(0)
    keys = jax.random.split(key, 8)

    # ---- Case 1/2: mixed matched + mismatched channels (fused 3-D path) ----
    layers = [-1, -2, -3]
    n = len(layers) + 1
    N, C, H, W = 2, 4, 16, 16
    x = jax.random.normal(keys[0], (N, C, H, W), dtype=jnp.float32)
    outputs = [
        jax.random.normal(keys[1], (N, 2, H, W), dtype=jnp.float32),  # nx > na
        jax.random.normal(keys[2], (N, 6, H, W), dtype=jnp.float32),  # nx < na
        jax.random.normal(keys[3], (N, C, H, W), dtype=jnp.float32),  # matched
    ]
    w_param = jax.random.normal(keys[4], (n,), dtype=jnp.float32)

    y = jax.block_until_ready(weighted_feature_fusion(x, outputs, layers, w_param))
    assert y.shape == (N, C, H, W)
    assert jnp.allclose(y, _reference(x, outputs, layers, w_param),
                        atol=1e-5, rtol=1e-5), "mismatch (mixed, weighted)"

    y = jax.block_until_ready(weighted_feature_fusion(x, outputs, layers, None))
    assert jnp.allclose(y, _reference(x, outputs, layers, None),
                        atol=1e-5, rtol=1e-5), "mismatch (mixed, unweighted)"

    # ---- Case 3/4: all-matched channels (lane-dense 2-D slab path) ---------
    layers2 = [-1, -2]
    n2 = len(layers2) + 1
    outputs2 = [
        jax.random.normal(keys[5], (N, C, H, W), dtype=jnp.float32),
        jax.random.normal(keys[6], (N, C, H, W), dtype=jnp.float32),
    ]
    w2 = jax.random.normal(keys[7], (n2,), dtype=jnp.float32)

    y2 = jax.block_until_ready(weighted_feature_fusion(x, outputs2, layers2, w2))
    assert jnp.allclose(y2, _reference(x, outputs2, layers2, w2),
                        atol=1e-5, rtol=1e-5), "mismatch (matched, weighted)"

    y2 = jax.block_until_ready(weighted_feature_fusion(x, outputs2, layers2, None))
    assert jnp.allclose(y2, _reference(x, outputs2, layers2, None),
                        atol=1e-5, rtol=1e-5), "mismatch (matched, unweighted)"

    print("KERNEL_OK")
</pallas_src>

<mosaic_0001>
module attributes {stable_mosaic.version = 11 : i64} {
  func.func @kernel(%arg0: i32, %arg1: i32, %arg2: memref<4xf32, #tpu.memory_space<smem>>, %arg3: memref<1x4x256xf32, #tpu.memory_space<vmem>>, %arg4: memref<1x4x256xf32, #tpu.memory_space<vmem>>, %arg5: memref<1x6x256xf32, #tpu.memory_space<vmem>>, %arg6: memref<1x2x256xf32, #tpu.memory_space<vmem>>, %arg7: memref<1x4x256xf32, #tpu.memory_space<vmem>>) attributes {dimension_semantics = [#tpu.dimension_semantics<parallel>, #tpu.dimension_semantics<parallel>], iteration_bounds = array<i64: 2, 1>, scalar_prefetch = 0 : i64, scratch_operands = 0 : i64, tpu.core_type = #tpu.core_type<tc>, window_params = [{transform_indices = @transform_0, window_bounds = array<i64: 4>}, {transform_indices = @transform_1, window_bounds = array<i64: 1, 4, 256>}, {transform_indices = @transform_2, window_bounds = array<i64: 1, 4, 256>}, {transform_indices = @transform_3, window_bounds = array<i64: 1, 6, 256>}, {transform_indices = @transform_4, window_bounds = array<i64: 1, 2, 256>}, {transform_indices = @transform_5, window_bounds = array<i64: 1, 4, 256>}]} {
    %c0 = arith.constant 0 : index
    %0 = memref.load %arg2[%c0] : memref<4xf32, #tpu.memory_space<smem>>
    %c1 = arith.constant 1 : index
    %1 = memref.load %arg2[%c1] : memref<4xf32, #tpu.memory_space<smem>>
    %c2 = arith.constant 2 : index
    %2 = memref.load %arg2[%c2] : memref<4xf32, #tpu.memory_space<smem>>
    %c3 = arith.constant 3 : index
    %3 = memref.load %arg2[%c3] : memref<4xf32, #tpu.memory_space<smem>>
    %c0_0 = arith.constant 0 : index
    %c0_1 = arith.constant 0 : index
    %c0_2 = arith.constant 0 : index
    %4 = vector.load %arg3[%c0_0, %c0_1, %c0_2] : memref<1x4x256xf32, #tpu.memory_space<vmem>>, vector<1x4x256xf32>
    %5 = vector.shape_cast %4 : vector<1x4x256xf32> to vector<4x256xf32>
    %6 = vector.broadcast %0 : f32 to vector<4x256xf32>
    %7 = arith.mulf %5, %6 : vector<4x256xf32>
    %c0_3 = arith.constant 0 : index
    %c0_4 = arith.constant 0 : index
    %c0_5 = arith.constant 0 : index
    %8 = vector.load %arg4[%c0_3, %c0_4, %c0_5] : memref<1x4x256xf32, #tpu.memory_space<vmem>>, vector<1x4x256xf32>
    %9 = vector.shape_cast %8 : vector<1x4x256xf32> to vector<4x256xf32>
    %10 = vector.broadcast %1 : f32 to vector<4x256xf32>
    %11 = arith.mulf %9, %10 : vector<4x256xf32>
    %12 = arith.addf %7, %11 : vector<4x256xf32>
    %c0_6 = arith.constant 0 : index
    %c0_7 = arith.constant 0 : index
    %c0_8 = arith.constant 0 : index
    %13 = vector.load %arg5[%c0_6, %c0_7, %c0_8] : memref<1x6x256xf32, #tpu.memory_space<vmem>>, vector<1x6x256xf32>
    %14 = vector.shape_cast %13 : vector<1x6x256xf32> to vector<6x256xf32>
    %15 = vector.broadcast %2 : f32 to vector<6x256xf32>
    %16 = arith.mulf %14, %15 : vector<6x256xf32>
    %17 = vector.extract_strided_slice %16 {offsets = [0, 0], sizes = [4, 256], strides = [1, 1]} : vector<6x256xf32> to vector<4x256xf32>
    %18 = arith.addf %12, %17 : vector<4x256xf32>
    %c0_9 = arith.constant 0 : index
    %c0_10 = arith.constant 0 : index
    %c0_11 = arith.constant 0 : index
    %19 = vector.load %arg6[%c0_9, %c0_10, %c0_11] : memref<1x2x256xf32, #tpu.memory_space<vmem>>, vector<1x2x256xf32>
    %20 = vector.shape_cast %19 : vector<1x2x256xf32> to vector<2x256xf32>
    %21 = vector.broadcast %3 : f32 to vector<2x256xf32>
    %22 = arith.mulf %20, %21 : vector<2x256xf32>
    %c0_12 = arith.constant 0 : index
    %c0_13 = arith.constant 0 : index
    %c0_14 = arith.constant 0 : index
    %23 = vector.load %arg7[%c0_12, %c0_13, %c0_14] : memref<1x4x256xf32, #tpu.memory_space<vmem>>, vector<1x4x256xf32>
    %24 = vector.shape_cast %23 : vector<1x4x256xf32> to vector<4x256xf32>
    %25 = vector.shape_cast %18 : vector<4x256xf32> to vector<1x4x256xf32>
    tpu.vector_store %arg7[%c0_12, %c0_13, %c0_14], %25 {strides = array<i32>} : memref<1x4x256xf32, #tpu.memory_space<vmem>>, vector<1x4x256xf32>,
    %26 = vector.extract_strided_slice %18 {offsets = [0, 0], sizes = [2, 256], strides = [1, 1]} : vector<4x256xf32> to vector<2x256xf32>
    %27 = arith.addf %26, %22 : vector<2x256xf32>
    %c0_15 = arith.constant 0 : index
    %c0_16 = arith.constant 0 : index
    %c0_17 = arith.constant 0 : index
    %28 = vector.load %arg7[%c0_15, %c0_16, %c0_17] : memref<1x4x256xf32, #tpu.memory_space<vmem>>, vector<1x2x256xf32>
    %29 = vector.shape_cast %28 : vector<1x2x256xf32> to vector<2x256xf32>
    %30 = vector.shape_cast %27 : vector<2x256xf32> to vector<1x2x256xf32>
    tpu.vector_store %arg7[%c0_15, %c0_16, %c0_17], %30 {strides = array<i32>} : memref<1x4x256xf32, #tpu.memory_space<vmem>>, vector<1x2x256xf32>,
    return
  }
  func.func @transform_0(%arg0: i32, %arg1: i32) -> i32 {
    %c0_i32 = arith.constant 0 : i32
    %c0_i32_0 = arith.constant 0 : i32
    return %c0_i32 : i32
  }
  func.func @transform_1(%arg0: i32, %arg1: i32) -> (i32, i32, i32) {
    %c0_i32 = arith.constant 0 : i32
    %c0_i32_0 = arith.constant 0 : i32
    return %arg0, %c0_i32, %arg1 : i32, i32, i32
  }
  func.func @transform_2(%arg0: i32, %arg1: i32) -> (i32, i32, i32) {
    %c0_i32 = arith.constant 0 : i32
    %c0_i32_0 = arith.constant 0 : i32
    return %arg0, %c0_i32, %arg1 : i32, i32, i32
  }
  func.func @transform_3(%arg0: i32, %arg1: i32) -> (i32, i32, i32) {
    %c0_i32 = arith.constant 0 : i32
    %c0_i32_0 = arith.constant 0 : i32
    return %arg0, %c0_i32, %arg1 : i32, i32, i32
  }
  func.func @transform_4(%arg0: i32, %arg1: i32) -> (i32, i32, i32) {
    %c0_i32 = arith.constant 0 : i32
    %c0_i32_0 = arith.constant 0 : i32
    return %arg0, %c0_i32, %arg1 : i32, i32, i32
  }
  func.func @transform_5(%arg0: i32, %arg1: i32) -> (i32, i32, i32) {
    %c0_i32 = arith.constant 0 : i32
    %c0_i32_0 = arith.constant 0 : i32
    return %arg0, %c0_i32, %arg1 : i32, i32, i32
  }
}

</mosaic_0001>

<bundles_post_ra>
// kernel: tpu_custom_call.1
= control target key start
LH: loop header
LB: loop body
LE: loop exit
PB: predicated region body
PF: predicated region fallthrough
CT: control target
= control target key end

     0   :  { %s945_s0 = inlined_call_operand.vmem [shape: f32[4], index: 0, kind: input, shape index: {}]   ;;  %s946_s1 = inlined_call_operand.vmem [shape: f32[2,4,256], index: 1, kind: input, shape index: {}]   ;;  %s947_s2 = inlined_call_operand.vmem [shape: f32[2,4,256], index: 2, kind: input, shape index: {}]   ;;  %s948_s3 = inlined_call_operand.vmem [shape: f32[2,6,256], index: 3, kind: input, shape index: {}]   ;;  %s949_s4 = inlined_call_operand.vmem [shape: f32[2,2,256], index: 4, kind: input, shape index: {}]   ;;  %s950_s5 = inlined_call_operand.hbm [shape: f32[2,4,256], index: 5, kind: output, shape index: {}]  }
   0x1   :  { %956 = sst [smem:[#allocation14_spill]] %s945_s0 }
   0x2   :  { %10 = vsyncpa [#allocation4], 0 }
   0x3   :  { %11 = vsyncpa [#allocation3], 0 }
   0x4   :  { %13 = vsyncpa [#allocation3 + $0x1], 0  ;;  %s799_s18 = smov 0   ;;  %s801_s19 = smov 0  }
   0x5   :  { %s803_s20 = smov 0   ;;  %s805_s21 = smov 0  }
   0x6   :  { %s807_s22 = smov 0   ;;  %s809_s23 = smov 0  }
   0x7 LB: > { %957 = sst [smem:[#allocation8_spill]] %s744_s18  ;;  %s571_s24 = sadd.s32 4294967295, %s764_s23   ;;  %s764_s23 = sphi %s809_s23, %s19_s23   ;;  %s760_s22 = sphi %s807_s22, %s975_s22   ;;  %s756_s21 = sphi %s805_s21, %s974_s21   ;;  %s752_s20 = sphi %s803_s20, %s973_s20   ;;  %s748_s19 = sphi %s801_s19, %s977_s19   ;;  %s744_s18 = sphi %s799_s18, %s976_s18  }
   0x8   : > { %958 = sst [smem:[#allocation9_spill]] %s752_s20  ;;  %s572_s25 = sadd.s32 4294967294, %s764_s23  }
   0x9   : > { %959 = sst [smem:[#allocation10_spill]] %s760_s22  ;;  %s31_s26 = sadd.s32 1, %s760_s22 }
   0xa   : > { %s173_s27 = sadd.s32 1, %s752_s20  ;;  %p33_p0 = scmp.ge.s32.totalorder %s31_s26, 2 }
   0xb   : > { %p183_p1 = scmp.ne.s32.totalorder %s752_s20, %s748_s19  ;;  %p184_p2 = scmp.eq.s32.totalorder %s571_s24, 1 }
   0xc   : > { %p189_p3 = scmp.ne.s32.totalorder %s748_s19, %s744_s18  ;;  %s979_s26 = smov (%p33_p0, %s31_s26), 0 }
   0xd   : > { %960 = sst [smem:[#allocation11_spill]] %s979_s26  ;;  %p839_p4 = por %p184_p2, %p183_p1 }
   0xe   : > { %p190_p5 = scmp.eq.s32.totalorder %s572_s25, 1  ;;  %s168_s29 = ssub.s32 %s760_s22, %s979_s26 }
   0xf   : > { %p573_p6 = scmp.ge.s32.totalorder %s764_s23, 1  ;;  %p171_p7 = scmp.eq.s32.totalorder %s168_s29, 0 }
  0x10   : > { %p846_p8 = por %p190_p5, %p189_p3  ;;  %p197_p9 = scmp.lt.s32.totalorder %s764_s23, 3 }
  0x11   : > { %s852_s6 = scalar_select %p171_p7, %s752_s20, %s173_s27  }
  0x12   : > { %s962_s30 = scalar_select %p846_p8, 1, 0 }
  0x13   : > { %964 = sst [smem:[#allocation13_spill]] %s852_s6  ;;  %p854_p10 = pnand %p573_p6, %p197_p9 }
  0x14   : > { %963 = sst [smem:[#allocation12_spill]] %s962_s30  ;;  %p858_p11 = scmp.eq.s32.totalorder %s571_s24, 0 }
  0x15   : > { %s967_s0 = sld [smem:[#allocation14_spill]]  ;;  %p606_p12 = pneg %p854_p10 }
  0x17   : > { %p607_p13 = pnand %p858_p11, %p606_p12 }
  0x19   : > { %p669_p1 = pneg %p607_p13 }
  0x1b   : > { %s210_s11 = sshll.u32 %s967_s0, 4  ;;  %s211_s11 = int_to_ptr.vmem [resolvable:$true] %s210_s11 }
  0x1c   : > { %s667_s12 = scalar_lea.vmem %s211_s11, 16  ;;  %p675_p5 = scmp.lt.s32.totalorder %s211_s11, %s211_s11 }
  0x1d   : > { %p668_p0 = scmp.ne.s32.totalorder %s211_s11, %s667_s12  ;;  %p676_p6 = scmp.lt.s32.totalorder %s667_s12, %s667_s12 }
  0x1f   : > { %p670_p2 = pnand %p669_p1, %p668_p0  ;;  %p677_p7 = por %p676_p6, %p675_p5 }
  0x21   : > { %p671_p3 = pneg %p670_p2 }
  0x23   : > { %p678_p9 = pnand %p677_p7, %p671_p3 }
  0x25   : > { %681 = shalt.err (!%p678_p9)
}
  0x26   : > { %s766_s13 = smov [#allocation2]   ;;  %275 = sbr.rel (%p854_p10) target bundleno = 82 (0x52), region = 40 }
  0x27   : > { %609 = dma.vmem_to_smem (!%p607_p13), %s211_s11, 16, %s766_s13, [#allocation4]  }
  0x2d   : > { %735 = dma.done.wait (%p858_p11), [#allocation4], 16  }
  0x2e   : > { %737 = vsyncadd (%p858_p11), [#allocation4], 4294967280 }
  0x2f   : > { %281 = sfence }
  0x30   : > { %p336_p12 = scmp.lt.s32.totalorder %s756_s21, 1  ;;  %s376_s14 = sld [smem:[#allocation2]]  ;;  %v767_v0 = vmov 1983009808   ;;  %v405_v2 = vlaneseq }
  0x31   : > { %v403_v1 = vunpack.c.l.s4 %v767_v0  ;;  %s587_s16 = sld [smem:[#allocation2 + $0x1]]  ;;  %s588_s24 = sld [smem:[#allocation2 + $0x2]] }
  0x32   : > { %s337_s17 = scalar_select %p336_p12, %s756_s21, 1  ;;  %v406_v4 = vshrl.u32 %v405_v2, 7 }
  0x33   : > { %s589_s25 = sld [smem:[#allocation2 + $0x3]]  ;;  %v404_v3 = vunpack.c.0.s8 %v403_v1  ;;  %s968_s22 = sand.u32 1, %s748_s19  }
  0x34   : > { %s595_s27 = sshll.u32 %s337_s17, 3  ;;  %s597_s29 = sshll.u32 %s337_s17, 4 }
  0x35   : > { %s343_s9 = scalar_lea.vmem %s946_s1, %s595_s27  ;;  %s353_s12 = scalar_lea.vmem %s947_s2, %s595_s27  ;;  %v407_v14 = vsub.s32 %v404_v3, %v406_v4 }
  0x36   : > { %s363_s15 = scalar_lea.vmem %s948_s3, %s597_s29  ;;  %s598_s26 = sshll.u32 %s337_s17, 2  ;;  %v380_v5 = vld [vmem:[%s343_s9] sm:$0xff]  ;;  %v381_v6 = vstv %s376_s14 }
  0x37   : > { %v383_v7 = vld [vmem:[%s353_s12] sm:$0xff]  ;;  %s578_s6 = sshll.u32 %s968_s22, 3  ;;  %s373_s18 = scalar_lea.vmem %s949_s4, %s598_s26  ;;  %v382_v8 = vmul.f32 %v381_v6, %v380_v5  ;;  %v384_v9 = vstv %s587_s16  ;;  %v388_v11 = vld [vmem:[%s363_s15 + $0x8] sm:$0x3f]  ;;  %v389_v15 = vstv %s588_s24 }
  0x38   : > { %v387_v10 = vld [vmem:[%s363_s15] sm:$0x3f]  ;;  %v385_v12 = vmul.f32 %v384_v9, %v383_v7  ;;  %v391_v19 = vmul.f32 %v389_v15, %v388_v11  ;;  %s334_s0 = scalar_lea.vmem [#allocation5], %s578_s6  ;;  %s599_s22 = sshll.u32 %s756_s21, 7 }
  0x39   : > { %v397_v13 = vld [vmem:[%s373_s18] sm:$0xf]  ;;  %v398_v16 = vstv %s589_s25  ;;  %v390_v18 = vmul.f32 %v389_v15, %v387_v10  ;;  %s429_s20 = sshll.u32 %s334_s0, 4  ;;  %s898_s30 = scalar_lea.hbm %s950_s5, %s599_s22  ;;  %s893_s20 = int_to_ptr.vmem [resolvable:$true] %s429_s20 }
  0x3a   : > { %v386_v17 = vadd.f32 %v385_v12, %v382_v8  ;;  %v399_v20 = vmul.f32 %v398_v16, %v397_v13  ;;  %s969_s14 = sand.u32 1, %s748_s19   ;;  %s682_s16 = scalar_lea.vmem %s893_s20, 128 }
  0x3b   : > { %v394_v21 = vcombine.low %v390_v18, %v391_v19  ;;  %s413_s15 = scalar_lea.sflag [#allocation3], %s969_s14  ;;  %p683_p10 = scmp.ne.s32.totalorder %s893_s20, %s682_s16 }
  0x3c   : > { %v408_v22 = vrot.slane %v399_v20, %v407_v14  ;;  %s768_s21 = smov [#allocation5]  }
  0x3d   : > { %v396_v23 = vadd.f32 %v394_v21, %v386_v17  ;;  %p684_p11 = pnand %p683_p10, %p839_p4  ;;  %s686_s6 = sshll.u32 %s768_s21, 4  ;;  %s687_s6 = int_to_ptr.vmem [resolvable:$false] %s686_s6 }
  0x3e   : > { %s688_s17 = scalar_lea.vmem %s687_s6, 256  ;;  %p689_p0 = scmp.lt.s32.totalorder %s893_s20, %s687_s6 }
  0x3f   : > { %400 = vst [vmem:[%s334_s0] sm:$0xff] %v396_v23  ;;  %v410_v24 = vadd.f32 %v408_v22, %v396_v23  ;;  %p685_p13 = pneg %p684_p11  ;;  %p690_p1 = scmp.lt.s32.totalorder %s688_s17, %s682_s16 }
  0x41   : > { %411 = vst [vmem:[%s334_s0] sm:$0x33] %v410_v24  ;;  %p691_p2 = por %p690_p1, %p689_p0 }
  0x43   : > { %p692_p3 = pnand %p691_p2, %p685_p13 }
  0x45   : > { %695 = shalt.err (!%p692_p3)
}
  0x46   : > { %s696_s24 = scalar_lea.hbm %s898_s30, 128  ;;  %s700_s29 = scalar_lea.hbm %s950_s5, 256 }
  0x47   : > { %p697_p5 = scmp.ne.s32.totalorder %s898_s30, %s696_s24  ;;  %p701_p9 = scmp.lt.u32.totalorder %s898_s30, %s950_s5 }
  0x48   : > { %p702_p12 = scmp.lt.u32.totalorder %s700_s29, %s696_s24  ;;  %p704_p11 = scmp.lt.u32.totalorder %s696_s24, %s898_s30 }
  0x49   : > { %p698_p6 = pnand %p697_p5, %p839_p4 }
  0x4a   : > { %p703_p10 = por %p702_p12, %p701_p9 }
  0x4b   : > { %p699_p7 = pneg %p698_p6 }
  0x4c   : > { %p705_p13 = por %p704_p11, %p703_p10 }
  0x4e   : > { %p706_p0 = pnand %p705_p13, %p699_p7 }
  0x50   : > { %709 = shalt.err (!%p706_p0)
}
  0x51   : > { %604 = dma.vmem_to_hbm [thread:$0]  (%p839_p4), %s893_s20, 128, %s898_s30, %s413_s15  }
  0x52 PF: > { %s970_s9 = sld [smem:[#allocation8_spill]]  ;;  %p616_p1 = scmp.ge.s32.totalorder %s764_s23, 2 }
  0x54   : > { %p611_p2 = pnand %p616_p1, %p846_p8 }
  0x58   : > { %s441_s11 = sand.u32 1, %s970_s9  }
  0x59   : > { %s442_s12 = scalar_lea.sflag [#allocation3], %s441_s11 }
  0x5a   : > { %739 = dma.done.wait (!%p611_p2), %s442_s12, 128  }
  0x5b   : > { %741 = vsyncadd (!%p611_p2), %s442_s12, 4294967168  ;;  %s19_s23 = sadd.s32 1, %s764_s23   ;;  %s972_s13 = sld [smem:[#allocation9_spill]] }
  0x5c   : > { %p16_p3 = scmp.ge.s32.totalorder %s19_s23, 4   ;;  %s973_s20 = sld [smem:[#allocation13_spill]] }
  0x5d   : > { %s974_s21 = sld [smem:[#allocation10_spill]]  ;;  %s975_s22 = sld [smem:[#allocation11_spill]] }
  0x5e   : > { %s976_s18 = smov %s748_s19  ;;  %18 = sbr.rel (!%p16_p3) target bundleno = 7 (0x7), region = 89 }
  0x61   : > { %s977_s19 = smov %s972_s13 }
  0x65   :  { %447 = vsyncpa [#allocation3], 1 }
  0x66   :  { %449 = vsyncpa [#allocation3 + $0x1], 1 }
  0x67   :  { %450 = vsyncpa [#allocation4], 1 }
  0x68   :  { %452 = vsyncpa [#allocation4 + $0x1], 1 }

</bundles_post_ra>
